<compile_context>
chip_gen: v6e
topology: v6e:2x2x1
jax: 0.10.0
libtpu: 0.0.40
codegen_flags: <defaults>
</compile_context>

<pallas_src>
import functools

import jax
import jax.numpy as jnp
from jax import lax
from jax.experimental import pallas as pl
from jax.experimental.pallas import tpu as pltpu


def _round_up(x, m):
    return (x + m - 1) // m * m


# --------------------------------------------------------------------------
# Pallas kernel: whole MLP / resnet-block / branch hot path for one batch tile
# --------------------------------------------------------------------------
def gamma_kernel(num_resnet_blocks, out_dim,
                 s_ref,                         # (TB, S)   int32 states
                 expand_ref, depth_ref,         # (S, F) bf16, (1, F) f32 constants
                 w1_ref, b1_ref,                # (F, H1) bf16, (1, H1) f32
                 w2_ref, b2_ref,                # (H1, R) bf16, (1, R) f32
                 res_w_ref, res_b_ref,          # (2NB, R, R) bf16, (2NB, 1, R) f32
                 wout_ref, bout_ref,            # (R, OP) bf16, (1, OP) f32 (lane-padded)
                 bw1y_ref, woutbw1_ref, bb1f_ref,  # (H1,512) bf16, (R,512) bf16, (1,512) f32
                 bw2row_ref, bb2_ref,           # (1, 512) f32, (1, 1) f32
                 out_ref):                      # (TB, OP) f32 output slab
    TB = s_ref.shape[0]
    OP = out_ref.shape[1]

    # ---- one-hot built in-kernel: bf16 expansion matmul + compare ----------
    # srep[b, f] == states[b, f // D]; exact in bf16 for state values < 256.
    s_bf = s_ref[...].astype(jnp.float32).astype(jnp.bfloat16)            # (TB, S)
    srep = jnp.dot(s_bf, expand_ref[...], preferred_element_type=jnp.float32)
    onehot = (jnp.abs(srep - depth_ref[...]) < 0.5).astype(jnp.bfloat16)  # (TB, F)

    # ---- fc1 + relu ---------------------------------------------------------
    h = jnp.dot(onehot, w1_ref[...], preferred_element_type=jnp.float32) + b1_ref[...]
    h = jnp.maximum(h, 0.0)
    y_bf = h.astype(jnp.bfloat16)                                          # saved for branch1

    # ---- fc2 + relu ---------------------------------------------------------
    z = jnp.dot(y_bf, w2_ref[...], preferred_element_type=jnp.float32) + b2_ref[...]
    z = jnp.maximum(z, 0.0)

    # ---- residual blocks (compile-time unrolled) ----------------------------
    for blk in range(num_resnet_blocks):
        res_inp = z
        t = jnp.dot(z.astype(jnp.bfloat16), res_w_ref[2 * blk],
                    preferred_element_type=jnp.float32) + res_b_ref[2 * blk]
        t = jnp.maximum(t, 0.0)
        t = jnp.dot(t.astype(jnp.bfloat16), res_w_ref[2 * blk + 1],
                    preferred_element_type=jnp.float32) + res_b_ref[2 * blk + 1]
        z = jnp.maximum(t + res_inp, 0.0)

    z_bf = z.astype(jnp.bfloat16)

    # ---- fc_out -> lane-padded main slab (cols >= out_dim are exactly 0) ----
    main_full = jnp.dot(z_bf, wout_ref[...],
                        preferred_element_type=jnp.float32) + bout_ref[...]

    # ---- branch fc1 with the main head folded in ----------------------------
    # concat([y, main]) @ bw1 == y @ bw1_y + z @ (wout @ bw1_m) + (bout @ bw1_m + bb1)
    bh = (jnp.dot(y_bf, bw1y_ref[...], preferred_element_type=jnp.float32)
          + jnp.dot(z_bf, woutbw1_ref[...], preferred_element_type=jnp.float32)
          + bb1f_ref[...])
    bh = jnp.maximum(bh, 0.0)                                              # (TB, 512) f32

    # ---- branch fc2 (512 -> 1) as VPU multiply + lane reduction -------------
    bsum = jnp.sum(bh * bw2row_ref[...], axis=-1, keepdims=True) + bb2_ref[...]
    branch = jnp.maximum(bsum, 0.0)                                        # (TB, 1)

    # scatter branch into lane `out_dim`, then one dense unmasked 128-lane store
    lane = lax.broadcasted_iota(jnp.int32, (TB, OP), 1)
    out_ref[...] = main_full + jnp.where(lane == out_dim, branch, 0.0)


# --------------------------------------------------------------------------
# Param prep: bf16 weights, lane-padded output head, folded branch fc1
# --------------------------------------------------------------------------
def _prepare_params(p, *, state_dim, one_hot_depth, h1_dim, out_dim, out_pad):
    bf, f32 = jnp.bfloat16, jnp.float32
    S, D = state_dim, one_hot_depth
    F = S * D
    kp = {}

    # constant one-hot tables (resident, hoisted out of the kernel)
    f_over_d = jnp.arange(F, dtype=jnp.int32) // D
    kp["expand"] = (f_over_d[None, :] ==
                    jnp.arange(S, dtype=jnp.int32)[:, None]).astype(bf)    # (S, F)
    kp["depth"] = (jnp.arange(F, dtype=jnp.int32) % D).astype(f32)[None, :]  # (1, F)

    kp["w1"] = p["w1"].astype(bf)
    kp["b1"] = p["b1"].astype(f32)
    kp["w2"] = p["w2"].astype(bf)
    kp["b2"] = p["b2"].astype(f32)
    kp["res_w"] = p["res_w"].astype(bf)
    kp["res_b"] = p["res_b"].astype(f32)

    R = p["wout"].shape[0]
    wout = jnp.zeros((R, out_pad), f32).at[:, :out_dim].set(p["wout"])
    bout = jnp.zeros((1, out_pad), f32).at[:, :out_dim].set(p["bout"])
    kp["wout"] = wout.astype(bf)
    kp["bout"] = bout

    bw1 = p["bw1"].astype(f32)
    bw1_y = bw1[:h1_dim, :]                                    # (H1, 512)
    bw1_m = bw1[h1_dim:, :]                                    # (out_dim, 512)
    kp["bw1_y"] = bw1_y.astype(bf)
    kp["wout_bw1"] = (p["wout"] @ bw1_m).astype(bf)            # (R, 512)
    kp["bb1_f"] = (p["bout"] @ bw1_m + p["bb1"]).astype(f32)   # (1, 512)

    kp["bw2_row"] = p["bw2"].reshape(1, -1).astype(f32)        # (1, 512)
    kp["bb2"] = p["bb2"].reshape(1, 1).astype(f32)             # (1, 1)
    return kp


# --------------------------------------------------------------------------
# Wrapper
# --------------------------------------------------------------------------
def gamma_forward(states, params, *, state_dim, one_hot_depth, h1_dim,
                  resnet_dim, num_resnet_blocks, out_dim, batch_tile=1024):
    assert one_hot_depth > 0, "one_hot_depth == 0 path not implemented"
    assert one_hot_depth < 256, "bf16 expansion matmul requires state values < 256"
    B = states.shape[0]
    out_pad = max(128, _round_up(out_dim + 1, 128))

    # batch tiling: multiple of 16 (bf16 sublane packing); split a single tile
    # in two so the "parallel" batch axis can shard across both v7x TCs.
    TB = min(batch_tile, _round_up(B, 16))
    if _round_up(B, TB) == TB and TB >= 32:
        TB = _round_up(TB // 2, 16)
    B_pad = _round_up(B, TB)

    s = states.astype(jnp.int32)
    if B_pad != B:
        s = jnp.pad(s, ((0, B_pad - B), (0, 0)))

    kp = _prepare_params(params, state_dim=state_dim, one_hot_depth=one_hot_depth,
                         h1_dim=h1_dim, out_dim=out_dim, out_pad=out_pad)
    ops = [kp["expand"], kp["depth"], kp["w1"], kp["b1"], kp["w2"], kp["b2"],
           kp["res_w"], kp["res_b"], kp["wout"], kp["bout"],
           kp["bw1_y"], kp["wout_bw1"], kp["bb1_f"], kp["bw2_row"], kp["bb2"]]

    kernel = functools.partial(gamma_kernel, num_resnet_blocks, out_dim)

    def full_spec(a):
        nd = a.ndim
        return pl.BlockSpec(a.shape, lambda i, _nd=nd: (0,) * _nd)

    F = state_dim * one_hot_depth
    flops = 2 * B_pad * (
        state_dim * F
        + F * h1_dim
        + h1_dim * resnet_dim
        + 2 * num_resnet_blocks * resnet_dim * resnet_dim
        + resnet_dim * out_pad
        + (h1_dim + resnet_dim) * 512
        + 512)
    param_bytes = sum(int(a.size) * a.dtype.itemsize for a in ops)
    bytes_accessed = param_bytes + int(s.size) * 4 + B_pad * out_pad * 4
    cost = pl.CostEstimate(flops=flops, transcendentals=0,
                           bytes_accessed=bytes_accessed)

    slab = pl.pallas_call(
        kernel,
        out_shape=jax.ShapeDtypeStruct((B_pad, out_pad), jnp.float32),
        grid=(B_pad // TB,),
        in_specs=[pl.BlockSpec((TB, state_dim), lambda i: (i, 0))]
                 + [full_spec(a) for a in ops],
        out_specs=pl.BlockSpec((TB, out_pad), lambda i: (i, 0)),
        compiler_params=pltpu.CompilerParams(
            dimension_semantics=("parallel",),        # shards batch over v7x's 2 TCs
            vmem_limit_bytes=16 * 1024 * 1024),        # honest: footprint is a few MiB
        cost_estimate=cost,
    )(s, *ops)

    main = slab[:B, :out_dim]
    branch = slab[:B, out_dim:out_dim + 1]
    return main, branch


# --------------------------------------------------------------------------
# Deterministic parameter init (PyTorch-Linear-style uniform ranges), f32
# --------------------------------------------------------------------------
def init_params(key, *, state_dim, one_hot_depth, h1_dim, resnet_dim,
                num_resnet_blocks, out_dim):
    F_in = state_dim * one_hot_depth

    def linear(key, fan_in, fan_out):
        k1, k2 = jax.random.split(key)
        bound = 1.0 / jnp.sqrt(float(fan_in))
        w = jax.random.uniform(k1, (fan_in, fan_out), jnp.float32, -bound, bound)
        b = jax.random.uniform(k2, (1, fan_out), jnp.float32, -bound, bound)
        return w, b

    keys = jax.random.split(key, 6 + 2 * num_resnet_blocks)
    p = {}
    p["w1"], p["b1"] = linear(keys[0], F_in, h1_dim)
    p["w2"], p["b2"] = linear(keys[1], h1_dim, resnet_dim)
    p["wout"], p["bout"] = linear(keys[2], resnet_dim, out_dim)
    p["bw1"], p["bb1"] = linear(keys[3], h1_dim + out_dim, 512)
    p["bw2"], p["bb2"] = linear(keys[4], 512, 1)

    res_w, res_b = [], []
    for i in range(2 * num_resnet_blocks):
        w, b = linear(keys[5 + i], resnet_dim, resnet_dim)
        res_w.append(w)
        res_b.append(b)
    p["res_w"] = jnp.stack(res_w, axis=0)          # (2*NB, R, R)
    p["res_b"] = jnp.stack(res_b, axis=0)          # (2*NB, 1, R)
    return p


# --------------------------------------------------------------------------
# Pure-f32 JAX reference mirroring the PyTorch forward (batch_norm=False).
# The kernel uses bf16 weights/activations with f32 accumulation, so it is
# compared against this reference with a loose-but-tight-enough tolerance.
# --------------------------------------------------------------------------
def reference_forward(states, p, *, state_dim, one_hot_depth, num_resnet_blocks):
    B = states.shape[0]
    x = jax.nn.one_hot(states.astype(jnp.int32), one_hot_depth,
                       dtype=jnp.float32).reshape(B, state_dim * one_hot_depth)
    x = jax.nn.relu(x @ p["w1"] + p["b1"])
    y = x
    x = jax.nn.relu(x @ p["w2"] + p["b2"])
    for blk in range(num_resnet_blocks):
        res = x
        x = jax.nn.relu(x @ p["res_w"][2 * blk] + p["res_b"][2 * blk])
        x = x @ p["res_w"][2 * blk + 1] + p["res_b"][2 * blk + 1]
        x = jax.nn.relu(x + res)
    main = x @ p["wout"] + p["bout"]
    ycat = jnp.concatenate([y, main], axis=-1)
    b = jax.nn.relu(ycat @ p["bw1"] + p["bb1"])
    b = jax.nn.relu(b @ p["bw2"] + p["bb2"])
    return main, b


if __name__ == "__main__":
    # small, module-consistent shapes
    B = 8
    state_dim = 8
    one_hot_depth = 6
    h1_dim = 32
    resnet_dim = 32
    num_resnet_blocks = 2
    out_dim = 4

    key = jax.random.PRNGKey(0)
    k_states, k_params = jax.random.split(key)

    states = jax.random.randint(k_states, (B, state_dim), 0, one_hot_depth,
                                dtype=jnp.int32)
    params = init_params(k_params, state_dim=state_dim,
                         one_hot_depth=one_hot_depth, h1_dim=h1_dim,
                         resnet_dim=resnet_dim,
                         num_resnet_blocks=num_resnet_blocks, out_dim=out_dim)

    main_out, branch_out = gamma_forward(
        states, params, state_dim=state_dim, one_hot_depth=one_hot_depth,
        h1_dim=h1_dim, resnet_dim=resnet_dim,
        num_resnet_blocks=num_resnet_blocks, out_dim=out_dim)
    jax.block_until_ready((main_out, branch_out))

    ref_main, ref_branch = reference_forward(
        states, params, state_dim=state_dim, one_hot_depth=one_hot_depth,
        num_resnet_blocks=num_resnet_blocks)

    assert main_out.shape == (B, out_dim) and branch_out.shape == (B, 1)
    assert jnp.allclose(main_out, ref_main, atol=1.5e-2, rtol=1.5e-2), (
        jnp.max(jnp.abs(main_out - ref_main)))
    assert jnp.allclose(branch_out, ref_branch, atol=1.5e-2, rtol=1.5e-2), (
        jnp.max(jnp.abs(branch_out - ref_branch)))
    print("KERNEL_OK")
</pallas_src>

<mosaic_0001>
module attributes {stable_mosaic.version = 11 : i64} {
  func.func @gamma_kernel(%arg0: i32, %arg1: memref<16x8xi32, #tpu.memory_space<vmem>>, %arg2: memref<8x48xbf16, #tpu.memory_space<vmem>>, %arg3: memref<1x48xf32, #tpu.memory_space<vmem>>, %arg4: memref<48x32xbf16, #tpu.memory_space<vmem>>, %arg5: memref<1x32xf32, #tpu.memory_space<vmem>>, %arg6: memref<32x32xbf16, #tpu.memory_space<vmem>>, %arg7: memref<1x32xf32, #tpu.memory_space<vmem>>, %arg8: memref<4x32x32xbf16, #tpu.memory_space<vmem>>, %arg9: memref<4x1x32xf32, #tpu.memory_space<vmem>>, %arg10: memref<32x128xbf16, #tpu.memory_space<vmem>>, %arg11: memref<1x128xf32, #tpu.memory_space<vmem>>, %arg12: memref<32x512xbf16, #tpu.memory_space<vmem>>, %arg13: memref<32x512xbf16, #tpu.memory_space<vmem>>, %arg14: memref<1x512xf32, #tpu.memory_space<vmem>>, %arg15: memref<1x512xf32, #tpu.memory_space<vmem>>, %arg16: memref<1x1xf32, #tpu.memory_space<vmem>>, %arg17: memref<16x128xf32, #tpu.memory_space<vmem>>) attributes {dimension_semantics = [#tpu.dimension_semantics<parallel>], iteration_bounds = array<i64: 1>, scalar_prefetch = 0 : i64, scratch_operands = 0 : i64, tpu.core_type = #tpu.core_type<tc>, window_params = [{transform_indices = @transform_0, window_bounds = array<i64: 16, 8>}, {pipeline_mode = #tpu.pipeline_mode<synchronous>, transform_indices = @transform_1, window_bounds = array<i64: 8, 48>}, {pipeline_mode = #tpu.pipeline_mode<synchronous>, transform_indices = @transform_2, window_bounds = array<i64: 1, 48>}, {pipeline_mode = #tpu.pipeline_mode<synchronous>, transform_indices = @transform_3, window_bounds = array<i64: 48, 32>}, {pipeline_mode = #tpu.pipeline_mode<synchronous>, transform_indices = @transform_4, window_bounds = array<i64: 1, 32>}, {pipeline_mode = #tpu.pipeline_mode<synchronous>, transform_indices = @transform_5, window_bounds = array<i64: 32, 32>}, {pipeline_mode = #tpu.pipeline_mode<synchronous>, transform_indices = @transform_6, window_bounds = array<i64: 1, 32>}, {pipeline_mode = #tpu.pipeline_mode<synchronous>, transform_indices = @transform_7, window_bounds = array<i64: 4, 32, 32>}, {pipeline_mode = #tpu.pipeline_mode<synchronous>, transform_indices = @transform_8, window_bounds = array<i64: 4, 1, 32>}, {pipeline_mode = #tpu.pipeline_mode<synchronous>, transform_indices = @transform_9, window_bounds = array<i64: 32, 128>}, {pipeline_mode = #tpu.pipeline_mode<synchronous>, transform_indices = @transform_10, window_bounds = array<i64: 1, 128>}, {pipeline_mode = #tpu.pipeline_mode<synchronous>, transform_indices = @transform_11, window_bounds = array<i64: 32, 512>}, {pipeline_mode = #tpu.pipeline_mode<synchronous>, transform_indices = @transform_12, window_bounds = array<i64: 32, 512>}, {pipeline_mode = #tpu.pipeline_mode<synchronous>, transform_indices = @transform_13, window_bounds = array<i64: 1, 512>}, {pipeline_mode = #tpu.pipeline_mode<synchronous>, transform_indices = @transform_14, window_bounds = array<i64: 1, 512>}, {pipeline_mode = #tpu.pipeline_mode<synchronous>, transform_indices = @transform_15, window_bounds = array<i64: 1, 1>}, {transform_indices = @transform_16, window_bounds = array<i64: 16, 128>}]} {
    %c0 = arith.constant 0 : index
    %c0_0 = arith.constant 0 : index
    %0 = vector.load %arg1[%c0, %c0_0] : memref<16x8xi32, #tpu.memory_space<vmem>>, vector<16x8xi32>
    %1 = arith.sitofp %0 : vector<16x8xi32> to vector<16x8xf32>
    %2 = arith.truncf %1 : vector<16x8xf32> to vector<16x8xbf16>
    %c0_1 = arith.constant 0 : index
    %c0_2 = arith.constant 0 : index
    %3 = vector.load %arg2[%c0_1, %c0_2] : memref<8x48xbf16, #tpu.memory_space<vmem>>, vector<8x48xbf16>
    %cst = arith.constant dense<0.000000e+00> : vector<16x48xf32>
    %4 = tpu.matmul %2, %3, %cst {dimension_numbers = #tpu.dot_dimension_numbers<[1], [0], [0], [1], [0, 0, 1, 1], [], []>} : vector<16x8xbf16>, vector<8x48xbf16>, vector<16x48xf32> -> vector<16x48xf32>
    %c0_3 = arith.constant 0 : index
    %c0_4 = arith.constant 0 : index
    %5 = vector.load %arg3[%c0_3, %c0_4] : memref<1x48xf32, #tpu.memory_space<vmem>>, vector<1x48xf32>
    %6 = vector.broadcast %5 : vector<1x48xf32> to vector<16x48xf32>
    %7 = arith.subf %4, %6 : vector<16x48xf32>
    %8 = math.absf %7 : vector<16x48xf32>
    %cst_5 = arith.constant 5.000000e-01 : f32
    %9 = vector.broadcast %cst_5 : f32 to vector<16x48xf32>
    %10 = arith.cmpf olt, %8, %9 : vector<16x48xf32>
    %11 = arith.extui %10 : vector<16x48xi1> to vector<16x48xi32>
    %12 = arith.sitofp %11 : vector<16x48xi32> to vector<16x48xf32>
    %13 = arith.truncf %12 : vector<16x48xf32> to vector<16x48xbf16>
    %c0_6 = arith.constant 0 : index
    %c0_7 = arith.constant 0 : index
    %14 = vector.load %arg4[%c0_6, %c0_7] : memref<48x32xbf16, #tpu.memory_space<vmem>>, vector<48x32xbf16>
    %cst_8 = arith.constant dense<0.000000e+00> : vector<16x32xf32>
    %15 = tpu.matmul %13, %14, %cst_8 {dimension_numbers = #tpu.dot_dimension_numbers<[1], [0], [0], [1], [0, 0, 1, 1], [], []>} : vector<16x48xbf16>, vector<48x32xbf16>, vector<16x32xf32> -> vector<16x32xf32>
    %c0_9 = arith.constant 0 : index
    %c0_10 = arith.constant 0 : index
    %16 = vector.load %arg5[%c0_9, %c0_10] : memref<1x32xf32, #tpu.memory_space<vmem>>, vector<1x32xf32>
    %17 = vector.broadcast %16 : vector<1x32xf32> to vector<16x32xf32>
    %18 = arith.addf %15, %17 : vector<16x32xf32>
    %cst_11 = arith.constant 0.000000e+00 : f32
    %19 = vector.broadcast %cst_11 : f32 to vector<16x32xf32>
    %20 = arith.maximumf %18, %19 : vector<16x32xf32>
    %21 = arith.truncf %20 : vector<16x32xf32> to vector<16x32xbf16>
    %c0_12 = arith.constant 0 : index
    %c0_13 = arith.constant 0 : index
    %22 = vector.load %arg6[%c0_12, %c0_13] : memref<32x32xbf16, #tpu.memory_space<vmem>>, vector<32x32xbf16>
    %cst_14 = arith.constant dense<0.000000e+00> : vector<16x32xf32>
    %23 = tpu.matmul %21, %22, %cst_14 {dimension_numbers = #tpu.dot_dimension_numbers<[1], [0], [0], [1], [0, 0, 1, 1], [], []>} : vector<16x32xbf16>, vector<32x32xbf16>, vector<16x32xf32> -> vector<16x32xf32>
    %c0_15 = arith.constant 0 : index
    %c0_16 = arith.constant 0 : index
    %24 = vector.load %arg7[%c0_15, %c0_16] : memref<1x32xf32, #tpu.memory_space<vmem>>, vector<1x32xf32>
    %25 = vector.broadcast %24 : vector<1x32xf32> to vector<16x32xf32>
    %26 = arith.addf %23, %25 : vector<16x32xf32>
    %cst_17 = arith.constant 0.000000e+00 : f32
    %27 = vector.broadcast %cst_17 : f32 to vector<16x32xf32>
    %28 = arith.maximumf %26, %27 : vector<16x32xf32>
    %29 = arith.truncf %28 : vector<16x32xf32> to vector<16x32xbf16>
    %c0_18 = arith.constant 0 : index
    %c0_19 = arith.constant 0 : index
    %c0_20 = arith.constant 0 : index
    %30 = vector.load %arg8[%c0_18, %c0_19, %c0_20] : memref<4x32x32xbf16, #tpu.memory_space<vmem>>, vector<1x32x32xbf16>
    %31 = vector.shape_cast %30 : vector<1x32x32xbf16> to vector<32x32xbf16>
    %cst_21 = arith.constant dense<0.000000e+00> : vector<16x32xf32>
    %32 = tpu.matmul %29, %31, %cst_21 {dimension_numbers = #tpu.dot_dimension_numbers<[1], [0], [0], [1], [0, 0, 1, 1], [], []>} : vector<16x32xbf16>, vector<32x32xbf16>, vector<16x32xf32> -> vector<16x32xf32>
    %c0_22 = arith.constant 0 : index
    %c0_23 = arith.constant 0 : index
    %c0_24 = arith.constant 0 : index
    %33 = vector.load %arg9[%c0_22, %c0_23, %c0_24] : memref<4x1x32xf32, #tpu.memory_space<vmem>>, vector<1x1x32xf32>
    %34 = vector.shape_cast %33 : vector<1x1x32xf32> to vector<1x32xf32>
    %35 = vector.broadcast %34 : vector<1x32xf32> to vector<16x32xf32>
    %36 = arith.addf %32, %35 : vector<16x32xf32>
    %cst_25 = arith.constant 0.000000e+00 : f32
    %37 = vector.broadcast %cst_25 : f32 to vector<16x32xf32>
    %38 = arith.maximumf %36, %37 : vector<16x32xf32>
    %39 = arith.truncf %38 : vector<16x32xf32> to vector<16x32xbf16>
    %c1 = arith.constant 1 : index
    %c0_26 = arith.constant 0 : index
    %c0_27 = arith.constant 0 : index
    %40 = vector.load %arg8[%c1, %c0_26, %c0_27] : memref<4x32x32xbf16, #tpu.memory_space<vmem>>, vector<1x32x32xbf16>
    %41 = vector.shape_cast %40 : vector<1x32x32xbf16> to vector<32x32xbf16>
    %cst_28 = arith.constant dense<0.000000e+00> : vector<16x32xf32>
    %42 = tpu.matmul %39, %41, %cst_28 {dimension_numbers = #tpu.dot_dimension_numbers<[1], [0], [0], [1], [0, 0, 1, 1], [], []>} : vector<16x32xbf16>, vector<32x32xbf16>, vector<16x32xf32> -> vector<16x32xf32>
    %c1_29 = arith.constant 1 : index
    %c0_30 = arith.constant 0 : index
    %c0_31 = arith.constant 0 : index
    %43 = vector.load %arg9[%c1_29, %c0_30, %c0_31] : memref<4x1x32xf32, #tpu.memory_space<vmem>>, vector<1x1x32xf32>
    %44 = vector.shape_cast %43 : vector<1x1x32xf32> to vector<1x32xf32>
    %45 = vector.broadcast %44 : vector<1x32xf32> to vector<16x32xf32>
    %46 = arith.addf %42, %45 : vector<16x32xf32>
    %47 = arith.addf %46, %28 : vector<16x32xf32>
    %cst_32 = arith.constant 0.000000e+00 : f32
    %48 = vector.broadcast %cst_32 : f32 to vector<16x32xf32>
    %49 = arith.maximumf %47, %48 : vector<16x32xf32>
    %50 = arith.truncf %49 : vector<16x32xf32> to vector<16x32xbf16>
    %c2 = arith.constant 2 : index
    %c0_33 = arith.constant 0 : index
    %c0_34 = arith.constant 0 : index
    %51 = vector.load %arg8[%c2, %c0_33, %c0_34] : memref<4x32x32xbf16, #tpu.memory_space<vmem>>, vector<1x32x32xbf16>
    %52 = vector.shape_cast %51 : vector<1x32x32xbf16> to vector<32x32xbf16>
    %cst_35 = arith.constant dense<0.000000e+00> : vector<16x32xf32>
    %53 = tpu.matmul %50, %52, %cst_35 {dimension_numbers = #tpu.dot_dimension_numbers<[1], [0], [0], [1], [0, 0, 1, 1], [], []>} : vector<16x32xbf16>, vector<32x32xbf16>, vector<16x32xf32> -> vector<16x32xf32>
    %c2_36 = arith.constant 2 : index
    %c0_37 = arith.constant 0 : index
    %c0_38 = arith.constant 0 : index
    %54 = vector.load %arg9[%c2_36, %c0_37, %c0_38] : memref<4x1x32xf32, #tpu.memory_space<vmem>>, vector<1x1x32xf32>
    %55 = vector.shape_cast %54 : vector<1x1x32xf32> to vector<1x32xf32>
    %56 = vector.broadcast %55 : vector<1x32xf32> to vector<16x32xf32>
    %57 = arith.addf %53, %56 : vector<16x32xf32>
    %cst_39 = arith.constant 0.000000e+00 : f32
    %58 = vector.broadcast %cst_39 : f32 to vector<16x32xf32>
    %59 = arith.maximumf %57, %58 : vector<16x32xf32>
    %60 = arith.truncf %59 : vector<16x32xf32> to vector<16x32xbf16>
    %c3 = arith.constant 3 : index
    %c0_40 = arith.constant 0 : index
    %c0_41 = arith.constant 0 : index
    %61 = vector.load %arg8[%c3, %c0_40, %c0_41] : memref<4x32x32xbf16, #tpu.memory_space<vmem>>, vector<1x32x32xbf16>
    %62 = vector.shape_cast %61 : vector<1x32x32xbf16> to vector<32x32xbf16>
    %cst_42 = arith.constant dense<0.000000e+00> : vector<16x32xf32>
    %63 = tpu.matmul %60, %62, %cst_42 {dimension_numbers = #tpu.dot_dimension_numbers<[1], [0], [0], [1], [0, 0, 1, 1], [], []>} : vector<16x32xbf16>, vector<32x32xbf16>, vector<16x32xf32> -> vector<16x32xf32>
    %c3_43 = arith.constant 3 : index
    %c0_44 = arith.constant 0 : index
    %c0_45 = arith.constant 0 : index
    %64 = vector.load %arg9[%c3_43, %c0_44, %c0_45] : memref<4x1x32xf32, #tpu.memory_space<vmem>>, vector<1x1x32xf32>
    %65 = vector.shape_cast %64 : vector<1x1x32xf32> to vector<1x32xf32>
    %66 = vector.broadcast %65 : vector<1x32xf32> to vector<16x32xf32>
    %67 = arith.addf %63, %66 : vector<16x32xf32>
    %68 = arith.addf %67, %49 : vector<16x32xf32>
    %cst_46 = arith.constant 0.000000e+00 : f32
    %69 = vector.broadcast %cst_46 : f32 to vector<16x32xf32>
    %70 = arith.maximumf %68, %69 : vector<16x32xf32>
    %71 = arith.truncf %70 : vector<16x32xf32> to vector<16x32xbf16>
    %c0_47 = arith.constant 0 : index
    %c0_48 = arith.constant 0 : index
    %72 = vector.load %arg10[%c0_47, %c0_48] : memref<32x128xbf16, #tpu.memory_space<vmem>>, vector<32x128xbf16>
    %cst_49 = arith.constant dense<0.000000e+00> : vector<16x128xf32>
    %73 = tpu.matmul %71, %72, %cst_49 {dimension_numbers = #tpu.dot_dimension_numbers<[1], [0], [0], [1], [0, 0, 1, 1], [], []>} : vector<16x32xbf16>, vector<32x128xbf16>, vector<16x128xf32> -> vector<16x128xf32>
    %c0_50 = arith.constant 0 : index
    %c0_51 = arith.constant 0 : index
    %74 = vector.load %arg11[%c0_50, %c0_51] : memref<1x128xf32, #tpu.memory_space<vmem>>, vector<1x128xf32>
    %75 = vector.broadcast %74 : vector<1x128xf32> to vector<16x128xf32>
    %76 = arith.addf %73, %75 : vector<16x128xf32>
    %c0_52 = arith.constant 0 : index
    %c0_53 = arith.constant 0 : index
    %77 = vector.load %arg12[%c0_52, %c0_53] : memref<32x512xbf16, #tpu.memory_space<vmem>>, vector<32x512xbf16>
    %cst_54 = arith.constant dense<0.000000e+00> : vector<16x512xf32>
    %78 = tpu.matmul %21, %77, %cst_54 {dimension_numbers = #tpu.dot_dimension_numbers<[1], [0], [0], [1], [0, 0, 1, 1], [], []>} : vector<16x32xbf16>, vector<32x512xbf16>, vector<16x512xf32> -> vector<16x512xf32>
    %c0_55 = arith.constant 0 : index
    %c0_56 = arith.constant 0 : index
    %79 = vector.load %arg13[%c0_55, %c0_56] : memref<32x512xbf16, #tpu.memory_space<vmem>>, vector<32x512xbf16>
    %cst_57 = arith.constant dense<0.000000e+00> : vector<16x512xf32>
    %80 = tpu.matmul %71, %79, %cst_57 {dimension_numbers = #tpu.dot_dimension_numbers<[1], [0], [0], [1], [0, 0, 1, 1], [], []>} : vector<16x32xbf16>, vector<32x512xbf16>, vector<16x512xf32> -> vector<16x512xf32>
    %81 = arith.addf %78, %80 : vector<16x512xf32>
    %c0_58 = arith.constant 0 : index
    %c0_59 = arith.constant 0 : index
    %82 = vector.load %arg14[%c0_58, %c0_59] : memref<1x512xf32, #tpu.memory_space<vmem>>, vector<1x512xf32>
    %83 = vector.broadcast %82 : vector<1x512xf32> to vector<16x512xf32>
    %84 = arith.addf %81, %83 : vector<16x512xf32>
    %cst_60 = arith.constant 0.000000e+00 : f32
    %85 = vector.broadcast %cst_60 : f32 to vector<16x512xf32>
    %86 = arith.maximumf %84, %85 : vector<16x512xf32>
    %c0_61 = arith.constant 0 : index
    %c0_62 = arith.constant 0 : index
    %87 = vector.load %arg15[%c0_61, %c0_62] : memref<1x512xf32, #tpu.memory_space<vmem>>, vector<1x512xf32>
    %88 = vector.broadcast %87 : vector<1x512xf32> to vector<16x512xf32>
    %89 = arith.mulf %86, %88 : vector<16x512xf32>
    %cst_63 = arith.constant dense<0.000000e+00> : vector<16xf32>
    %90 = vector.multi_reduction <add>, %89, %cst_63 [1] : vector<16x512xf32> to vector<16xf32>
    %91 = vector.shape_cast %90 : vector<16xf32> to vector<16x1xf32>
    %c0_64 = arith.constant 0 : index
    %c0_65 = arith.constant 0 : index
    %92 = vector.load %arg16[%c0_64, %c0_65] : memref<1x1xf32, #tpu.memory_space<vmem>>, vector<1x1xf32>
    %93 = vector.broadcast %92 : vector<1x1xf32> to vector<16x1xf32>
    %94 = arith.addf %91, %93 : vector<16x1xf32>
    %cst_66 = arith.constant 0.000000e+00 : f32
    %95 = vector.broadcast %cst_66 : f32 to vector<16x1xf32>
    %96 = arith.maximumf %94, %95 : vector<16x1xf32>
    %97 = tpu.iota {dimensions = array<i32: 1>} : vector<16x128xi32>
    %c4_i32 = arith.constant 4 : i32
    %98 = vector.broadcast %c4_i32 : i32 to vector<16x128xi32>
    %99 = arith.cmpi eq, %97, %98 : vector<16x128xi32>
    %cst_67 = arith.constant 0.000000e+00 : f32
    %100 = vector.shape_cast %96 : vector<16x1xf32> to vector<16x1xf32>
    %101 = vector.broadcast %100 : vector<16x1xf32> to vector<16x128xf32>
    %102 = vector.broadcast %cst_67 : f32 to vector<16x128xf32>
    %103 = arith.select %99, %101, %102 : vector<16x128xi1>, vector<16x128xf32>
    %104 = arith.addf %76, %103 : vector<16x128xf32>
    %c0_68 = arith.constant 0 : index
    %c0_69 = arith.constant 0 : index
    %105 = vector.load %arg17[%c0_68, %c0_69] : memref<16x128xf32, #tpu.memory_space<vmem>>, vector<16x128xf32>
    tpu.vector_store %arg17[%c0_68, %c0_69], %104 {strides = array<i32>} : memref<16x128xf32, #tpu.memory_space<vmem>>, vector<16x128xf32>,
    return
  }
  func.func @transform_0(%arg0: i32) -> (i32, i32) {
    %c0_i32 = arith.constant 0 : i32
    %c0_i32_0 = arith.constant 0 : i32
    return %arg0, %c0_i32 : i32, i32
  }
  func.func @transform_1(%arg0: i32) -> (i32, i32) {
    %c0_i32 = arith.constant 0 : i32
    %c0_i32_0 = arith.constant 0 : i32
    %c0_i32_1 = arith.constant 0 : i32
    return %c0_i32, %c0_i32_0 : i32, i32
  }
  func.func @transform_2(%arg0: i32) -> (i32, i32) {
    %c0_i32 = arith.constant 0 : i32
    %c0_i32_0 = arith.constant 0 : i32
    %c0_i32_1 = arith.constant 0 : i32
    return %c0_i32, %c0_i32_0 : i32, i32
  }
  func.func @transform_3(%arg0: i32) -> (i32, i32) {
    %c0_i32 = arith.constant 0 : i32
    %c0_i32_0 = arith.constant 0 : i32
    %c0_i32_1 = arith.constant 0 : i32
    return %c0_i32, %c0_i32_0 : i32, i32
  }
  func.func @transform_4(%arg0: i32) -> (i32, i32) {
    %c0_i32 = arith.constant 0 : i32
    %c0_i32_0 = arith.constant 0 : i32
    %c0_i32_1 = arith.constant 0 : i32
    return %c0_i32, %c0_i32_0 : i32, i32
  }
  func.func @transform_5(%arg0: i32) -> (i32, i32) {
    %c0_i32 = arith.constant 0 : i32
    %c0_i32_0 = arith.constant 0 : i32
    %c0_i32_1 = arith.constant 0 : i32
    return %c0_i32, %c0_i32_0 : i32, i32
  }
  func.func @transform_6(%arg0: i32) -> (i32, i32) {
    %c0_i32 = arith.constant 0 : i32
    %c0_i32_0 = arith.constant 0 : i32
    %c0_i32_1 = arith.constant 0 : i32
    return %c0_i32, %c0_i32_0 : i32, i32
  }
  func.func @transform_7(%arg0: i32) -> (i32, i32, i32) {
    %c0_i32 = arith.constant 0 : i32
    %c0_i32_0 = arith.constant 0 : i32
    %c0_i32_1 = arith.constant 0 : i32
    %c0_i32_2 = arith.constant 0 : i32
    return %c0_i32, %c0_i32_0, %c0_i32_1 : i32, i32, i32
  }
  func.func @transform_8(%arg0: i32) -> (i32, i32, i32) {
    %c0_i32 = arith.constant 0 : i32
    %c0_i32_0 = arith.constant 0 : i32
    %c0_i32_1 = arith.constant 0 : i32
    %c0_i32_2 = arith.constant 0 : i32
    return %c0_i32, %c0_i32_0, %c0_i32_1 : i32, i32, i32
  }
  func.func @transform_9(%arg0: i32) -> (i32, i32) {
    %c0_i32 = arith.constant 0 : i32
    %c0_i32_0 = arith.constant 0 : i32
    %c0_i32_1 = arith.constant 0 : i32
    return %c0_i32, %c0_i32_0 : i32, i32
  }
  func.func @transform_10(%arg0: i32) -> (i32, i32) {
    %c0_i32 = arith.constant 0 : i32
    %c0_i32_0 = arith.constant 0 : i32
    %c0_i32_1 = arith.constant 0 : i32
    return %c0_i32, %c0_i32_0 : i32, i32
  }
  func.func @transform_11(%arg0: i32) -> (i32, i32) {
    %c0_i32 = arith.constant 0 : i32
    %c0_i32_0 = arith.constant 0 : i32
    %c0_i32_1 = arith.constant 0 : i32
    return %c0_i32, %c0_i32_0 : i32, i32
  }
  func.func @transform_12(%arg0: i32) -> (i32, i32) {
    %c0_i32 = arith.constant 0 : i32
    %c0_i32_0 = arith.constant 0 : i32
    %c0_i32_1 = arith.constant 0 : i32
    return %c0_i32, %c0_i32_0 : i32, i32
  }
  func.func @transform_13(%arg0: i32) -> (i32, i32) {
    %c0_i32 = arith.constant 0 : i32
    %c0_i32_0 = arith.constant 0 : i32
    %c0_i32_1 = arith.constant 0 : i32
    return %c0_i32, %c0_i32_0 : i32, i32
  }
  func.func @transform_14(%arg0: i32) -> (i32, i32) {
    %c0_i32 = arith.constant 0 : i32
    %c0_i32_0 = arith.constant 0 : i32
    %c0_i32_1 = arith.constant 0 : i32
    return %c0_i32, %c0_i32_0 : i32, i32
  }
  func.func @transform_15(%arg0: i32) -> (i32, i32) {
    %c0_i32 = arith.constant 0 : i32
    %c0_i32_0 = arith.constant 0 : i32
    %c0_i32_1 = arith.constant 0 : i32
    return %c0_i32, %c0_i32_0 : i32, i32
  }
  func.func @transform_16(%arg0: i32) -> (i32, i32) {
    %c0_i32 = arith.constant 0 : i32
    %c0_i32_0 = arith.constant 0 : i32
    return %arg0, %c0_i32 : i32, i32
  }
}

</mosaic_0001>

<bundles_post_ra>
// kernel: tpu_custom_call.1
= control target key start
LH: loop header
LB: loop body
LE: loop exit
PB: predicated region body
PF: predicated region fallthrough
CT: control target
= control target key end

     0   :  { %s1827_s0 = inlined_call_operand.vmem [shape: s32[16,8], index: 0, kind: input, shape index: {}]   ;;  %s1828_s1 = inlined_call_operand.hbm [shape: bf16[8,48], index: 1, kind: input, shape index: {}]   ;;  %s1829_s2 = inlined_call_operand.hbm [shape: f32[1,48], index: 2, kind: input, shape index: {}]   ;;  %s1830_s3 = inlined_call_operand.vmem [shape: bf16[48,32], index: 3, kind: input, shape index: {}]   ;;  %s1831_s4 = inlined_call_operand.hbm [shape: f32[1,32], index: 4, kind: input, shape index: {}]   ;;  %s1832_s5 = inlined_call_operand.hbm [shape: bf16[32,32], index: 5, kind: input, shape index: {}]   ;;  %s1833_s6 = inlined_call_operand.hbm [shape: f32[1,32], index: 6, kind: input, shape index: {}]   ;;  %s1834_s7 = inlined_call_operand.vmem [shape: bf16[4,32,32], index: 7, kind: input, shape index: {}]   ;;  %s1835_s8 = inlined_call_operand.hbm [shape: f32[4,1,32], index: 8, kind: input, shape index: {}]   ;;  %s1836_s9 = inlined_call_operand.vmem [shape: bf16[32,128], index: 9, kind: input, shape index: {}]   ;;  %s1837_s10 = inlined_call_operand.hbm [shape: f32[1,128], index: 10, kind: input, shape index: {}]   ;;  %s1838_s11 = inlined_call_operand.hbm [shape: bf16[32,512], index: 11, kind: input, shape index: {}]   ;;  %s1839_s12 = inlined_call_operand.hbm [shape: bf16[32,512], index: 12, kind: input, shape index: {}]   ;;  %s1840_s13 = inlined_call_operand.vmem [shape: f32[1,512], index: 13, kind: input, shape index: {}]   ;;  %s1841_s14 = inlined_call_operand.vmem [shape: f32[1,512], index: 14, kind: input, shape index: {}]   ;;  %s1842_s15 = inlined_call_operand.<no memory space> [shape: f32[1,1], index: 15, kind: input, shape index: {}]   ;;  %s1843_s16 = inlined_call_operand.hbm [shape: f32[16,128], index: 16, kind: output, shape index: {}]  }
   0x1   :  { %1845 = sst [smem:[#allocation25_spill]] %s1827_s0  ;;  %v21_v0 = vstv %s1842_s15 }
   0x2   :  { %22 = vst [vmem:[#allocation2] sm:$0x1] %v21_v0 }
   0x3   :  { %23 = vsyncpa [#allocation4], 0 }
   0x4   :  { %24 = vsyncpa [#allocation7], 0 }
   0x5   :  { %25 = vsyncpa [#allocation10], 0 }
   0x6   :  { %26 = vsyncpa [#allocation13], 0 }
   0x7   :  { %27 = vsyncpa [#allocation16], 0 }
   0x8   :  { %28 = vsyncpa [#allocation5], 0  ;;  %s1573_s23 = smov [#allocation6]   ;;  %s1574_s25 = smov [#allocation9]  }
   0x9   :  { %s47_s24 = sshll.u32 %s1573_s23, 4  ;;  %s68_s26 = sshll.u32 %s1574_s25, 4  ;;  %s48_s24 = int_to_ptr.vmem [resolvable:$true] %s47_s24  ;;  %s69_s26 = int_to_ptr.vmem [resolvable:$true] %s68_s26 }
   0xa   :  { %s1369_s27 = scalar_lea.vmem %s48_s24, 16  ;;  %s1373_s28 = scalar_lea.vmem %s48_s24, 32 }
   0xb   :  { %p1370_p0 = scmp.ne.s32.totalorder %s48_s24, %s1369_s27  ;;  %p1374_p1 = scmp.lt.s32.totalorder %s48_s24, %s48_s24 }
   0xc   :  { %p1375_p2 = scmp.lt.s32.totalorder %s1373_s28, %s1369_s27 }
   0xe   :  { %p1376_p3 = por %p1375_p2, %p1374_p1 }
  0x10   :  { %p1377_p4 = pnand %p1376_p3, %p1370_p0 }
  0x12   :  { %1380 = shalt.err (!%p1377_p4)
}
  0x13   :  { %50 = dma.hbm_to_vmem [thread:$0]  %s1829_s2, 16, %s48_s24, [#allocation7]  }
  0x14   :  { %s1389_s30 = scalar_lea.vmem %s69_s26, 256  ;;  %p1394_p6 = scmp.lt.s32.totalorder %s69_s26, %s69_s26 }
  0x15   :  { %p1390_p5 = scmp.ne.s32.totalorder %s69_s26, %s1389_s30  ;;  %p1395_p7 = scmp.lt.s32.totalorder %s1389_s30, %s1389_s30 }
  0x17   :  { %p1396_p8 = por %p1395_p7, %p1394_p6 }
  0x19   :  { %p1397_p9 = pnand %p1396_p8, %p1390_p5 }
  0x1b   :  { %1400 = shalt.err (!%p1397_p9)
}
  0x1c   :  { %s1575_s0 = smov 64   ;;  %s1576_s17 = smov 4  }
  0x1d   :  { %74 = dma.hbm_to_vmem [thread:$0]  %s1832_s5, 256, %s69_s26, [#allocation10], %s1575_s0, %s1575_s0, %s1576_s17  }
  0x1e   :  { %s1577_s20 = smov [#allocation12]  }
  0x1f   :  { %s92_s21 = sshll.u32 %s1577_s20, 4  ;;  %s93_s21 = int_to_ptr.vmem [resolvable:$true] %s92_s21 }
  0x20   :  { %s1409_s22 = scalar_lea.vmem %s93_s21, 64  ;;  %p1414_p11 = scmp.lt.s32.totalorder %s93_s21, %s93_s21 }
  0x21   :  { %p1410_p10 = scmp.ne.s32.totalorder %s93_s21, %s1409_s22  ;;  %p1415_p12 = scmp.lt.s32.totalorder %s1409_s22, %s1409_s22 }
  0x23   :  { %p1416_p13 = por %p1415_p12, %p1414_p11 }
  0x25   :  { %p1417_p0 = pnand %p1416_p13, %p1410_p10 }
  0x27   :  { %1420 = shalt.err (!%p1417_p0)
}
  0x28   :  { %s1578_s2 = smov 16   ;;  %s1579_s23 = smov 1  }
  0x29   :  { %98 = dma.hbm_to_vmem [thread:$0]  %s1835_s8, 64, %s93_s21, [#allocation13], %s1578_s2, %s1578_s2, %s1579_s23  }
  0x2a   :  { %s1580_s27 = smov [#allocation15]  }
  0x2b   :  { %s116_s5 = sshll.u32 %s1580_s27, 4  ;;  %s117_s5 = int_to_ptr.vmem [resolvable:$true] %s116_s5 }
  0x2c   :  { %s1429_s26 = scalar_lea.vmem %s117_s5, 1024  ;;  %p1434_p2 = scmp.lt.s32.totalorder %s117_s5, %s117_s5 }
  0x2d   :  { %p1430_p1 = scmp.ne.s32.totalorder %s117_s5, %s1429_s26  ;;  %p1435_p3 = scmp.lt.s32.totalorder %s1429_s26, %s1429_s26 }
  0x2f   :  { %p1436_p4 = por %p1435_p3, %p1434_p2 }
  0x31   :  { %p1437_p5 = pnand %p1436_p4, %p1430_p1 }
  0x33   :  { %1440 = shalt.err (!%p1437_p5)
}
  0x34   :  { %s1581_s28 = smov 256   ;;  %s1582_s30 = smov [#allocation3]  }
  0x35   :  { %122 = dma.hbm_to_vmem [thread:$0]  %s1838_s11, 1024, %s117_s5, [#allocation16], %s1581_s28, %s1581_s28, %s1578_s2  }
  0x36   :  { %s37_s8 = sshll.u32 %s1582_s30, 4  ;;  %s1583_s0 = smov [#allocation8]   ;;  %s38_s8 = int_to_ptr.vmem [resolvable:$true] %s37_s8 }
  0x37   :  { %s59_s17 = sshll.u32 %s1583_s0, 4  ;;  %s1449_s18 = scalar_lea.vmem %s38_s8, 64  ;;  %s60_s17 = int_to_ptr.vmem [resolvable:$true] %s59_s17 }
  0x38   :  { %p1450_p6 = scmp.ne.s32.totalorder %s38_s8, %s1449_s18  ;;  %p1454_p7 = scmp.lt.s32.totalorder %s38_s8, %s38_s8 }
  0x39   :  { %p1455_p8 = scmp.lt.s32.totalorder %s1449_s18, %s1449_s18 }
  0x3b   :  { %p1456_p9 = por %p1455_p8, %p1454_p7 }
  0x3d   :  { %p1457_p10 = pnand %p1456_p9, %p1450_p6 }
  0x3f   :  { %1460 = shalt.err (!%p1457_p10)
}
  0x40   :  { %40 = dma.hbm_to_vmem [thread:$0]  %s1828_s1, 64, %s38_s8, [#allocation4]  }
  0x41   :  { %s1469_s21 = scalar_lea.vmem %s60_s17, 16  ;;  %s1473_s11 = scalar_lea.vmem %s60_s17, 32 }
  0x42   :  { %p1470_p11 = scmp.ne.s32.totalorder %s60_s17, %s1469_s21  ;;  %p1474_p12 = scmp.lt.s32.totalorder %s60_s17, %s60_s17 }
  0x43   :  { %p1475_p13 = scmp.lt.s32.totalorder %s1473_s11, %s1469_s21 }
  0x45   :  { %p1476_p0 = por %p1475_p13, %p1474_p12 }
  0x47   :  { %p1477_p1 = pnand %p1476_p0, %p1470_p11 }
  0x49   :  { %1480 = shalt.err (!%p1477_p1)
}
  0x4a   :  { %62 = dma.hbm_to_vmem [thread:$0]  %s1831_s4, 16, %s60_s17, [#allocation7]  }
  0x4b   :  { %s1584_s24 = smov [#allocation11]   ;;  %s1585_s27 = smov [#allocation14]  }
  0x4c   :  { %s81_s25 = sshll.u32 %s1584_s24, 4  ;;  %s107_s5 = sshll.u32 %s1585_s27, 4  ;;  %s82_s25 = int_to_ptr.vmem [resolvable:$true] %s81_s25  ;;  %s108_s5 = int_to_ptr.vmem [resolvable:$true] %s107_s5 }
  0x4d   :  { %s1489_s26 = scalar_lea.vmem %s82_s25, 16  ;;  %s1493_s1 = scalar_lea.vmem %s82_s25, 32 }
  0x4e   :  { %p1490_p2 = scmp.ne.s32.totalorder %s82_s25, %s1489_s26  ;;  %p1494_p3 = scmp.lt.s32.totalorder %s82_s25, %s82_s25 }
  0x4f   :  { %p1495_p4 = scmp.lt.s32.totalorder %s1493_s1, %s1489_s26 }
  0x51   :  { %p1496_p5 = por %p1495_p4, %p1494_p3 }
  0x53   :  { %p1497_p6 = pnand %p1496_p5, %p1490_p2 }
  0x55   :  { %1500 = shalt.err (!%p1497_p6)
}
  0x56   :  { %84 = dma.hbm_to_vmem [thread:$0]  %s1833_s6, 16, %s82_s25, [#allocation10]  }
  0x57   :  { %s1509_s30 = scalar_lea.vmem %s108_s5, 16  ;;  %s1513_s4 = scalar_lea.vmem %s108_s5, 32 }
  0x58   :  { %p1510_p7 = scmp.ne.s32.totalorder %s108_s5, %s1509_s30  ;;  %p1514_p8 = scmp.lt.s32.totalorder %s108_s5, %s108_s5 }
  0x59   :  { %p1515_p9 = scmp.lt.s32.totalorder %s1513_s4, %s1509_s30 }
  0x5b   :  { %p1516_p10 = por %p1515_p9, %p1514_p8 }
  0x5d   :  { %p1517_p11 = pnand %p1516_p10, %p1510_p7 }
  0x5f   :  { %1520 = shalt.err (!%p1517_p11)
}
  0x60   :  { %110 = dma.hbm_to_vmem [thread:$0]  %s1837_s10, 16, %s108_s5, [#allocation13]  }
  0x61   :  { %s1586_s17 = smov [#allocation17]  }
  0x62   :  { %s128_s18 = sshll.u32 %s1586_s17, 4  ;;  %s129_s18 = int_to_ptr.vmem [resolvable:$true] %s128_s18 }
  0x63   :  { %s1529_s19 = scalar_lea.vmem %s129_s18, 1024  ;;  %p1534_p13 = scmp.lt.s32.totalorder %s129_s18, %s129_s18 }
  0x64   :  { %p1530_p12 = scmp.ne.s32.totalorder %s129_s18, %s1529_s19  ;;  %p1535_p0 = scmp.lt.s32.totalorder %s1529_s19, %s1529_s19 }
  0x66   :  { %p1536_p1 = por %p1535_p0, %p1534_p13 }
  0x68   :  { %p1537_p2 = pnand %p1536_p1, %p1530_p12 }
  0x6a   :  { %1540 = shalt.err (!%p1537_p2)
}
  0x6b   :  { %134 = dma.hbm_to_vmem [thread:$0]  %s1839_s12, 1024, %s129_s18, [#allocation16], %s1581_s28, %s1581_s28, %s1578_s2  }
  0x6c   :  { %1561 = dma.done.wait [#allocation4], 64  }
  0x6d   :  { %1562 = vsyncadd [#allocation4], 4294967232 }
  0x6e   :  { %1563 = dma.done.wait [#allocation7], 32  }
  0x6f   :  { %1564 = vsyncadd [#allocation7], 4294967264 }
  0x70   :  { %1565 = dma.done.wait [#allocation10], 272  }
  0x71   :  { %1566 = vsyncadd [#allocation10], 4294967024 }
  0x72   :  { %1567 = dma.done.wait [#allocation13], 80  }
  0x73   :  { %1568 = vsyncadd [#allocation13], 4294967216 }
  0x74   :  { %1569 = dma.done.wait [#allocation16], 2048  }
  0x75   :  { %1570 = vsyncadd [#allocation16], 4294965248  ;;  %v1587_v1 = vmov 0.0   ;;  %vm1588_vm0 = vmmov 0   ;;  %vm179_vm1 = vcmask 1043456   ;;  %s1846_s2 = sld [smem:[#allocation25_spill]] }
  0x76   :  { %1236 = vmatprep.subr.bf16.mxu1 %v1587_v1  ;;  %1238 = vmatprep.mubr.msk.bf16.mxu1 %vm1588_vm0, %v1587_v1  ;;  %v174_v2 = vld [vmem:[#allocation3] sm:$0xf]  ;;  %vm175_vm2 = vcmask 64512   ;;  %v1322_v9 = vld [vmem:[%s1830_s3 + $0x10] sm:$0xff]   ;;  %v1323_v10 = vld [vmem:[%s1830_s3 + $0x8] sm:$0xff]   ;;  %vm273_vm5 = vcmask 392192  }
  0x77   :  { %1252 = vmatprep.subr.bf16.mxu0 %v1587_v1  ;;  %1256 = vmatprep.mubr.msk.bf16.mxu0 %vm1588_vm0, %v1587_v1  ;;  %v181_v5 = vsel %vm179_vm1, %v174_v2, 0  ;;  %v1324_v11 = vld [vmem:[%s1830_s3] sm:$0xff]   ;;  %v1325_v24 = vld [vmem:[#allocation9 + $0x8] sm:$0xff]   ;;  %v1326_v25 = vld [vmem:[#allocation9] sm:$0xff]   ;;  %vm344_vm6 = vcmask 261120  }
  0x78   :  { %1237 = vmatpush3.bf16.msra.mxu1 %v181_v5  ;;  %v1147_v12 = vld [vmem:[#allocation6] ss:$0 sm:$0xff]  ;;  %1253 = vmatpush3.bf16.msra.mxu0 %v1325_v24  ;;  %v1150_v26 = vld [vmem:[#allocation8] ss:$0 sm:$0xff]  ;;  %v1327_v36 = vld [vmem:[%s1834_s7 + $0x8] sm:$0xff]  }
  0x79   :  { %1242 = vmatprep.subr.bf16.mxu1 %v1587_v1  ;;  %1254 = vmatprep.subr.bf16.mxu0 %v1587_v1  ;;  %v1328_v37 = vld [vmem:[%s1834_s7] sm:$0xff]   ;;  %v1155_v38 = vld [vmem:[#allocation11] ss:$0 sm:$0xff]  ;;  %v1330_v49 = vld [vmem:[%s1834_s7 + $0x10] sm:$0xff]  }
  0x7a   :  { %v1329_v48 = vld [vmem:[%s1834_s7 + $0x18] sm:$0xff]   ;;  %v1331_v60 = vld [vmem:[%s1834_s7 + $0x28] sm:$0xff]   ;;  %v1332_v61 = vld [vmem:[%s1834_s7 + $0x20] sm:$0xff]  }
  0x7b   :  { %v169_v3 = vld [vmem:[%s1846_s2] sm:$0xff]  ;;  %v170_v4 = vld [vmem:[%s1846_s2 + $0x8] sm:$0xff]  ;;  %v1159_v50 = vld [vmem:[#allocation12] ss:$0 sm:$0xff] }
  0x7c   :  { %v171_v6 = vcvt.s32.f32 %v169_v3  ;;  %v172_v7 = vcvt.s32.f32 %v170_v4  ;;  %1255 = vmatpush3.bf16.msra.mxu0 %v1326_v25  ;;  %v1167_v62 = vld [vmem:[#allocation12 + $0x1] ss:$0 sm:$0xff]  ;;  %v1335_v24 = vld [vmem:[%s1836_s9 + $0x8] sm:$0xff]   ;;  %v1336_v25 = vld [vmem:[#allocation17 + $0x20] ss:$16 sps:$4 sm:$0xff]  }
  0x7d   :  { %1260 = vmatprep.subr.bf16.mxu0 %v1587_v1 }
  0x7e   :  { %v173_v8 = vpack.c.bf16 %v172_v7, %v171_v6 }
  0x80   :  { %1239 = vmatmul.mubr.msk.bf16.vlgmr.msra.gmra.mxu1 %vm175_vm2, %v173_v8 }
  0x81   :  { %1248 = vmatprep.mubr.msk.bf16.mxu1 %vm1588_vm0, %v1587_v1  ;;  %1243 = vmatpush3.bf16.msra.mxu1 %v1322_v9 }
  0x82   :  { %1244 = vmatprep.subr.bf16.mxu1 %v1587_v1 }
  0x85   :  { %1245 = vmatpush3.bf16.msra.mxu1 %v1323_v10 }
  0x86   :  { %1246 = vmatprep.subr.bf16.mxu1 %v1587_v1 }
  0x89   :  { %1247 = vmatpush3.bf16.msra.mxu1 %v1324_v11  ;;  %v1333_v11 = vld [vmem:[%s1834_s7 + $0x38] sm:$0xff]  }
  0x8a   :  { %1268 = vmatprep.subr.bf16.mxu1 %v1587_v1 }
 0x140   :  { %v217_v13 = vpop.f32.mrf.mxu1 }
 0x141   :  { %v231_v14 = vsub.f32 %v217_v13, %v1147_v12  ;;  %v1175_v13 = vld [vmem:[#allocation12 + $0x2] ss:$0 sm:$0xff] }
 0x142   :  { %v1240_v15 = vpop.f32.mrf.mxu1 }
 0x143   :  { %v233_v16 = vand.u32 2147483647, %v231_v14 }
 0x144   :  { %v220_v17 = vpop.f32.mrf.mxu1 }
 0x145   :  { %v232_v18 = vsub.f32 %v220_v17, %v1147_v12  ;;  %vm235_vm3 = vcmp.lt.f32.partialorder %v233_v16, 0.5  ;;  %v1334_v12 = vld [vmem:[%s1834_s7 + $0x30] sm:$0xff]  }
 0x146   :  { %v1241_v19 = vpop.f32.mrf.mxu1  ;;  %v1148_v21 = vsel %vm235_vm3, 1.0, %v1587_v1 }
 0x147   :  { %v234_v20 = vand.u32 2147483647, %v232_v18 }
 0x149   :  { %vm236_vm4 = vcmp.lt.f32.partialorder %v234_v20, 0.5 }
 0x14a   :  { %v1149_v22 = vsel %vm236_vm4, 1.0, %v1587_v1 }
 0x14b   :  { %v241_v23 = vpack.c.bf16 %v1149_v22, %v1148_v21 }
 0x14d   :  { %1249 = vmatmul.mubr.msk.bf16.vlgmr.msra.gmra.mxu1 %vm273_vm5, %v241_v23  ;;  %v1338_v23 = vld [vmem:[#allocation17 + $0x24] ss:$16 sps:$4 sm:$0xff]  }
 0x14e   :  { %1272 = vmatprep.mubr.msk.bf16.mxu1 %vm1588_vm0, %v1587_v1  ;;  %1269 = vmatpush3.bf16.msra.mxu1 %v1329_v48  ;;  %v1349_v48 = vld [vmem:[#allocation17 + $0x8] ss:$16 sps:$4 sm:$0xff]  }
 0x14f   :  { %1270 = vmatprep.subr.bf16.mxu1 %v1587_v1 }
 0x152   :  { %1271 = vmatpush3.bf16.msra.mxu1 %v1330_v49  ;;  %v1352_v49 = vld [vmem:[#allocation15] ss:$16 sps:$4 sm:$0xff]  }
 0x153   :  { %1284 = vmatprep.subr.bf16.mxu1 %v1587_v1 }
 0x20d   :  { %v311_v27 = vpop.f32.mrf.mxu1 }
 0x20e   :  { %v312_v29 = vadd.f32 %v1150_v26, %v311_v27  ;;  %v1339_v27 = vld [vmem:[%s1836_s9] sm:$0xff]  }
 0x20f   :  { %v1250_v28 = vpop.f32.mrf.mxu1 }
 0x210   :  { %v318_v33 = vmax.f32 %v312_v29, 0.0  ;;  %v1340_v28 = vld [vmem:[#allocation17] ss:$16 sps:$4 sm:$0xff]   ;;  %v1345_v29 = vld [vmem:[#allocation17 + $0x2c] ss:$16 sps:$4 sm:$0xff]  }
 0x211   :  { %v314_v30 = vpop.f32.mrf.mxu1 }
 0x212   :  { %v315_v31 = vadd.f32 %v1150_v26, %v314_v30  ;;  %v1342_v26 = vld [vmem:[#allocation17 + $0x4] ss:$16 sps:$4 sm:$0xff]   ;;  %v1589_v30 = vmov 0  }
 0x213   :  { %v1251_v32 = vpop.f32.mrf.mxu1  ;;  %1320 = vset.pattern.permute.xlu1 %v1589_v30  ;;  %1321 = vset.pattern.permute.xlu0 %v1589_v30 }
 0x214   :  { %v319_v34 = vmax.f32 %v315_v31, 0.0  ;;  %v1348_v31 = vld [vmem:[#allocation15 + $0x24] ss:$16 sps:$4 sm:$0xff]   ;;  %v1183_v32 = vld [vmem:[#allocation12 + $0x3] ss:$0 sm:$0xff] }
 0x216   :  { %v1749_v35 = vpack.c.bf16 %v319_v34, %v318_v33 }
 0x218   :  { %1257 = vmatmul.mubr.msk.bf16.vlgmr.msra.gmra.mxu0 %vm344_vm6, %v1749_v35 }
 0x219   :  { %1264 = vmatprep.mubr.msk.bf16.mxu0 %vm1588_vm0, %v1587_v1  ;;  %1261 = vmatpush3.bf16.msra.mxu0 %v1327_v36 }
 0x21a   :  { %1262 = vmatprep.subr.bf16.mxu0 %v1587_v1 }
 0x21d   :  { %1263 = vmatpush3.bf16.msra.mxu0 %v1328_v37 }
 0x21e   :  { %1276 = vmatprep.subr.bf16.mxu0 %v1587_v1 }
 0x2d8   :  { %v382_v39 = vpop.f32.mrf.mxu0 }
 0x2d9   :  { %v383_v41 = vadd.f32 %v1155_v38, %v382_v39 }
 0x2da   :  { %v1258_v40 = vpop.f32.mrf.mxu0 }
 0x2db   :  { %v389_v45 = vmax.f32 %v383_v41, 0.0 }
 0x2dc   :  { %v385_v42 = vpop.f32.mrf.mxu0 }
 0x2dd   :  { %v386_v43 = vadd.f32 %v1155_v38, %v385_v42 }
 0x2de   :  { %v1259_v44 = vpop.f32.mrf.mxu0 }
 0x2df   :  { %v390_v46 = vmax.f32 %v386_v43, 0.0  ;;  %v1343_v43 = vld [vmem:[#allocation17 + $0x28] ss:$16 sps:$4 sm:$0xff]   ;;  %v1346_v44 = vld [vmem:[#allocation15 + $0x20] ss:$16 sps:$4 sm:$0xff]  }
 0x2e1   :  { %v391_v47 = vpack.c.bf16 %v390_v46, %v389_v45 }
 0x2e3   :  { %1265 = vmatmul.mubr.msk.bf16.vlgmr.msra.gmra.mxu0 %vm344_vm6, %v391_v47  ;;  %v1354_v47 = vld [vmem:[#allocation15 + $0x4] ss:$16 sps:$4 sm:$0xff]  }
 0x2e4   :  { %1280 = vmatprep.mubr.msk.bf16.mxu0 %vm1588_vm0, %v1587_v1  ;;  %1277 = vmatpush3.bf16.msra.mxu0 %v1331_v60 }
 0x2e5   :  { %1278 = vmatprep.subr.bf16.mxu0 %v1587_v1 }
 0x2e8   :  { %1279 = vmatpush3.bf16.msra.mxu0 %v1332_v61 }
 0x2e9   :  { %1292 = vmatprep.subr.bf16.mxu0 %v1587_v1 }
 0x3a3   :  { %v452_v51 = vpop.f32.mrf.mxu0 }
 0x3a4   :  { %v453_v53 = vadd.f32 %v1159_v50, %v452_v51  ;;  %v1355_v51 = vld [vmem:[#allocation15 + $0x28] ss:$16 sps:$4 sm:$0xff]  }
 0x3a5   :  { %v1266_v52 = vpop.f32.mrf.mxu0 }
 0x3a6   :  { %v459_v57 = vmax.f32 %v453_v53, 0.0  ;;  %v1360_v52 = vld [vmem:[#allocation15 + $0xc] ss:$16 sps:$4 sm:$0xff]   ;;  %v1358_v53 = vld [vmem:[#allocation15 + $0x8] ss:$16 sps:$4 sm:$0xff]  }
 0x3a7   :  { %v455_v54 = vpop.f32.mrf.mxu0 }
 0x3a8   :  { %v456_v55 = vadd.f32 %v1159_v50, %v455_v54  ;;  %v1357_v50 = vld [vmem:[#allocation15 + $0x2c] ss:$16 sps:$4 sm:$0xff]   ;;  %v1019_v54 = vlaneseq }
 0x3a9   :  { %v1267_v56 = vpop.f32.mrf.mxu0 }
 0x3aa   :  { %v460_v58 = vmax.f32 %v456_v55, 0.0 }
 0x3ac   :  { %v461_v59 = vpack.c.bf16 %v460_v58, %v459_v57  ;;  %v1020_v57 = vshrl.u32 %v1019_v54, 7 }
 0x3ae   :  { %1273 = vmatmul.mubr.msk.bf16.vlgmr.msra.gmra.mxu1 %vm344_vm6, %v461_v59 }
 0x3af   :  { %1288 = vmatprep.mubr.msk.bf16.mxu1 %vm1588_vm0, %v1587_v1  ;;  %1285 = vmatpush3.bf16.msra.mxu1 %v1333_v11  ;;  %v1029_v11 = vsub.s32 2, %v1020_v57 }
 0x3b0   :  { %1286 = vmatprep.subr.bf16.mxu1 %v1587_v1 }
 0x3b3   :  { %1287 = vmatpush3.bf16.msra.mxu1 %v1334_v12 }
 0x3b4   :  { %817 = vmatprep.subr.bf16.mxu1 %v1338_v23 }
 0x46e   :  { %v524_v63 = vpop.f32.mrf.mxu1 }
 0x46f   :  { %v525_v0 = vadd.f32 %v1167_v62, %v524_v63  ;;  %v1017_v63 = vld [vmem:[%s1840_s13] sm:$0xf]  ;;  %s1590_s13 = smov [#allocation18]  }
 0x470   :  { %v1274_v2 = vpop.f32.mrf.mxu1 }
 0x471   :  { %v531_v4 = vadd.f32 %v525_v0, %v389_v45  ;;  %v1025_v0 = vsub.s32 1, %v1020_v57 }
 0x472   :  { %v527_v3 = vpop.f32.mrf.mxu1 }
 0x473   :  { %v528_v5 = vadd.f32 %v1167_v62, %v527_v3  ;;  %v533_v8 = vmax.f32 %v531_v4, 0.0  ;;  %v1021_v62 = vsub.s32 0, %v1020_v57 }
 0x474   :  { %v1275_v6 = vpop.f32.mrf.mxu1 }
 0x475   :  { %v532_v7 = vadd.f32 %v528_v5, %v390_v46  ;;  %v1351_v46 = vld [vmem:[#allocation17 + $0xc] ss:$16 sps:$4 sm:$0xff]   ;;  %v1022_v5 = vrot.slane %v1017_v63, %v1021_v62 }
 0x477   :  { %v534_v9 = vmax.f32 %v532_v7, 0.0  ;;  %v1026_v7 = vrot.slane %v1017_v63, %v1025_v0 }
 0x479   :  { %v535_v10 = vpack.c.bf16 %v534_v9, %v533_v8 }
 0x47b   :  { %1281 = vmatmul.mubr.msk.bf16.vlgmr.msra.gmra.mxu0 %vm344_vm6, %v535_v10 }
 0x47c   :  { %1296 = vmatprep.mubr.msk.bf16.mxu0 %vm1588_vm0, %v1587_v1  ;;  %1293 = vmatpush3.bf16.msra.mxu0 %v1335_v24  ;;  %v1030_v24 = vrot.slane %v1017_v63, %v1029_v11 }
 0x47d   :  { %1294 = vmatprep.subr.bf16.mxu0 %v1587_v1 }
 0x480   :  { %1295 = vmatpush3.bf16.msra.mxu0 %v1339_v27 }
 0x481   :  { %860 = vmatprep.subr.bf16.mxu0 %v1345_v29 }
 0x53b   :  { %v598_v14 = vpop.f32.mrf.mxu0 }
 0x53c   :  { %v599_v16 = vadd.f32 %v1175_v13, %v598_v14 }
 0x53d   :  { %v1282_v15 = vpop.f32.mrf.mxu0 }
 0x53e   :  { %v605_v20 = vmax.f32 %v599_v16, 0.0  ;;  %v1055_v15 = vld [vmem:[%s1841_s14] sm:$0xf]  ;;  %s1130_s14 = sshll.u32 %s1590_s13, 4  ;;  %s1131_s14 = int_to_ptr.vmem [resolvable:$true] %s1130_s14 }
 0x53f   :  { %v601_v17 = vpop.f32.mrf.mxu0  ;;  %s1541_s23 = scalar_lea.vmem %s1131_s14, 256  ;;  %p1546_p4 = scmp.lt.s32.totalorder %s1131_s14, %s1131_s14 }
 0x540   :  { %v602_v18 = vadd.f32 %v1175_v13, %v601_v17  ;;  %p1542_p3 = scmp.ne.s32.totalorder %s1131_s14, %s1541_s23  ;;  %p1547_p5 = scmp.lt.s32.totalorder %s1541_s23, %s1541_s23 }
 0x541   :  { %v1283_v19 = vpop.f32.mrf.mxu0 }
 0x542   :  { %v606_v21 = vmax.f32 %v602_v18, 0.0  ;;  %v1033_v18 = vsub.s32 3, %v1020_v57  ;;  %v1064_v19 = vrot.slane %v1055_v15, %v1025_v0  ;;  %p1548_p6 = por %p1547_p5, %p1546_p4 }
 0x544   :  { %v607_v22 = vpack.c.bf16 %v606_v21, %v605_v20  ;;  %p1549_p7 = pnand %p1548_p6, %p1542_p3 }
 0x546   :  { %1289 = vmatmul.mubr.msk.bf16.vlgmr.msra.gmra.mxu1 %vm344_vm6, %v607_v22 }
 0x547   :  { %818 = vmatpush1.bf16.msra.mxu1 %v1336_v25  ;;  %837 = vmatprep.mubr.bf16.mxu1 %v1589_v30 }
 0x548   :  { %819 = vmatprep.subr.bf16.mxu1 %v1342_v26  ;;  %v1060_v26 = vrot.slane %v1055_v15, %v1021_v62 }
 0x54b   :  { %820 = vmatpush1.bf16.msra.mxu1 %v1340_v28 }
 0x54c   :  { %943 = vmatprep.subr.bf16.mxu1 %v1348_v31  ;;  %v1034_v31 = vrot.slane %v1017_v63, %v1033_v18 }
 0x606   :  { %v670_v33 = vpop.f32.mrf.mxu1 }
 0x607   :  { %v671_v1 = vadd.f32 %v1183_v32, %v670_v33 }
 0x608   :  { %v1290_v34 = vpop.f32.mrf.mxu1 }
 0x609   :  { %v677_v37 = vadd.f32 %v671_v1, %v533_v8 }
 0x60a   :  { %v673_v36 = vpop.f32.mrf.mxu1 }
 0x60b   :  { %v674_v38 = vadd.f32 %v1183_v32, %v673_v36  ;;  %v679_v41 = vmax.f32 %v677_v37, 0.0  ;;  %v1068_v37 = vrot.slane %v1055_v15, %v1029_v11  ;;  %v1187_v11 = vld [vmem:[#allocation14] ss:$0 sm:$0xff] }
 0x60c   :  { %v1291_v39 = vpop.f32.mrf.mxu1 }
 0x60d   :  { %v678_v40 = vadd.f32 %v674_v38, %v534_v9 }
 0x60f   :  { %v680_v42 = vmax.f32 %v678_v40, 0.0 }
 0x611   :  { %v681_v45 = vpack.c.bf16 %v680_v42, %v679_v41 }
 0x613   :  { %1297 = vmatmul.mubr.msk.bf16.vlgmr.msra.gmra.mxu0 %vm344_vm6, %v681_v45  ;;  %1199 = vmatmul.mubr.msk.bf16.vlgmr.msra.gmra.mxu1 %vm344_vm6, %v681_v45 }
 0x614   :  { %861 = vmatpush1.bf16.msra.mxu0 %v1343_v43  ;;  %944 = vmatpush1.bf16.msra.mxu1 %v1346_v44  ;;  %v1072_v44 = vrot.slane %v1055_v15, %v1033_v18 }
 0x615   :  { %862 = vmatprep.subr.bf16.mxu0 %v1351_v46  ;;  %945 = vmatprep.subr.bf16.mxu1 %v1354_v47 }
 0x616   :  { %880 = vmatprep.mubr.bf16.mxu0 %v1589_v30  ;;  %963 = vmatprep.mubr.bf16.mxu1 %v1589_v30 }
 0x618   :  { %863 = vmatpush1.bf16.msra.mxu0 %v1349_v48  ;;  %946 = vmatpush1.bf16.msra.mxu1 %v1352_v49 }
 0x619   :  { %986 = vmatprep.subr.bf16.mxu0 %v1357_v50 }
 0x61b   :  { %1200 = vmatmul.mubr.msk.bf16.vlgmr.msra.gmra.mxu0 %vm344_vm6, %v681_v45  ;;  %1209 = vmatmul.mubr.msk.bf16.vlgmr.msra.gmra.mxu1 %vm344_vm6, %v1749_v35 }
 0x61c   :  { %987 = vmatpush1.bf16.msra.mxu0 %v1355_v51  ;;  %1006 = vmatprep.mubr.bf16.mxu0 %v1589_v30 }
 0x61d   :  { %988 = vmatprep.subr.bf16.mxu0 %v1360_v52 }
 0x620   :  { %989 = vmatpush1.bf16.msra.mxu0 %v1358_v53 }
 0x623   :  { %1210 = vmatmul.mubr.msk.bf16.vlgmr.msra.gmra.mxu0 %vm344_vm6, %v1749_v35 }
 0x6d3   :  { %v1810_v55 = vpop.f32.mrf.mxu0  ;;  %v839_v56 = vpop.f32.mrf.mxu1 }
 0x6d5   :  { %v1298_v58 = vpop.f32.mrf.mxu0  ;;  %v841_v59 = vpop.f32.mrf.mxu1 }
 0x6d7   :  { %v1813_v60 = vpop.f32.mrf.mxu0  ;;  %v843_v61 = vpop.f32.mrf.mxu1 }
 0x6d9   :  { %v1299_v2 = vpop.f32.mrf.mxu0  ;;  %v845_v3 = vpop.f32.mrf.mxu1 }
 0x6db   :  { %v882_v35 = vpop.f32.mrf.mxu0  ;;  %v965_v4 = vpop.f32.mrf.mxu1 }
 0x6dc   :  { %v966_v6 = vadd.f32 %v965_v4, %v839_v56 }
 0x6dd   :  { %v884_v8 = vpop.f32.mrf.mxu0  ;;  %v967_v9 = vpop.f32.mrf.mxu1 }
 0x6de   :  { %v968_v10 = vadd.f32 %v967_v9, %v841_v59  ;;  %v1039_v12 = vadd.f32 %v1022_v5, %v966_v6 }
 0x6df   :  { %v886_v13 = vpop.f32.mrf.mxu0  ;;  %v969_v14 = vpop.f32.mrf.mxu1 }
 0x6e0   :  { %v1040_v16 = vadd.f32 %v1026_v7, %v968_v10  ;;  %v970_v17 = vadd.f32 %v969_v14, %v843_v61  ;;  %v1047_v25 = vmax.f32 %v1039_v12, 0.0  ;;  %v1107_v10 = vand.u32 127, %v1019_v54 }
 0x6e1   :  { %v888_v20 = vpop.f32.mrf.mxu0  ;;  %v971_v21 = vpop.f32.mrf.mxu1  ;;  %v743_v12 = vadd.f32 %v1187_v11, %v1810_v55 }
 0x6e2   :  { %v1048_v22 = vmax.f32 %v1040_v16, 0.0  ;;  %v972_v23 = vadd.f32 %v971_v21, %v845_v3  ;;  %v1043_v27 = vadd.f32 %v1022_v5, %v970_v17  ;;  %v1077_v38 = vmul.f32 %v1060_v26, %v1047_v25 }
 0x6e3   :  { %v1008_v28 = vpop.f32.mrf.mxu0  ;;  %vm1108_vm7 = vcmp.eq.s32.totalorder %v1107_v10, 4  ;;  %v746_v16 = vadd.f32 %v1187_v11, %v1813_v60 }
 0x6e4   :  { %v1044_v29 = vadd.f32 %v1026_v7, %v972_v23  ;;  %v1009_v30 = vadd.f32 %v1008_v28, %v882_v35  ;;  %v1078_v32 = vmul.f32 %v1064_v19, %v1048_v22  ;;  %v1051_v39 = vmax.f32 %v1043_v27, 0.0  ;;  %v1211_v35 = vld [vmem:[#allocation2] ss:$0 sm:$0xff] }
 0x6e5   :  { %v1010_v33 = vpop.f32.mrf.mxu0 }
 0x6e6   :  { %v1052_v1 = vmax.f32 %v1044_v29, 0.0  ;;  %v1041_v34 = vadd.f32 %v1030_v24, %v1009_v30  ;;  %v1011_v36 = vadd.f32 %v1010_v33, %v884_v8  ;;  %v1085_v47 = vadd.f32 %v1078_v32, %v1077_v38 }
 0x6e7   :  { %v1012_v40 = vpop.f32.mrf.mxu0  ;;  %v1081_v52 = vmul.f32 %v1060_v26, %v1051_v39 }
 0x6e8   :  { %v1049_v41 = vmax.f32 %v1041_v34, 0.0  ;;  %v1042_v42 = vadd.f32 %v1034_v31, %v1011_v36  ;;  %v1013_v43 = vadd.f32 %v1012_v40, %v886_v13  ;;  %v1082_v45 = vmul.f32 %v1064_v19, %v1052_v1 }
 0x6e9   :  { %v1014_v46 = vpop.f32.mrf.mxu0 }
 0x6ea   :  { %v1050_v48 = vmax.f32 %v1042_v42, 0.0  ;;  %v1045_v49 = vadd.f32 %v1030_v24, %v1013_v43  ;;  %v1015_v50 = vadd.f32 %v1014_v46, %v888_v20  ;;  %v1079_v51 = vmul.f32 %v1068_v37, %v1049_v41 }
 0x6eb   :  { %v1090_v63 = vadd.f32 %v1082_v45, %v1081_v52 }
 0x6ec   :  { %v1053_v53 = vmax.f32 %v1045_v49, 0.0  ;;  %v1046_v56 = vadd.f32 %v1034_v31, %v1015_v50  ;;  %v1080_v57 = vmul.f32 %v1072_v44, %v1050_v48  ;;  %v1086_v58 = vadd.f32 %v1085_v47, %v1079_v51 }
 0x6ee   :  { %v1083_v59 = vmul.f32 %v1068_v37, %v1053_v53  ;;  %v1054_v61 = vmax.f32 %v1046_v56, 0.0  ;;  %v1087_v62 = vadd.f32 %v1086_v58, %v1080_v57 }
 0x6f0   :  { %1088 = vadd.xlane.f32.xlu0 %v1087_v62  ;;  %v1084_v0 = vmul.f32 %v1072_v44, %v1054_v61  ;;  %v1091_v2 = vadd.f32 %v1090_v63, %v1083_v59 }
 0x6f2   :  { %v1092_v3 = vadd.f32 %v1091_v2, %v1084_v0 }
 0x6f4   :  { %1093 = vadd.xlane.f32.xlu0 %v1092_v3 }
 0x779   :  { %v1089_v4 = vpop.xlane.xlu0 %1088 }
 0x77a   :  { %v1102_v5 = vadd.f32 %v1211_v35, %v1089_v4 }
 0x77c   :  { %v1104_v6 = vmax.f32 %v1102_v5, 0.0 }
 0x77d   :  { %v1094_v7 = vpop.xlane.xlu0 %1093 }
 0x77e   :  { %v1103_v8 = vadd.f32 %v1211_v35, %v1094_v7  ;;  %1111 = vperm.xlu1 %1320, %v1104_v6  }
 0x780   :  { %v1105_v9 = vmax.f32 %v1103_v8, 0.0 }
 0x782   :  { %1116 = vperm.xlu1 %1320, %v1105_v9  }
 0x7f9   :  { %v1112_v13 = vpop.permute.xlu1 %1111 }
 0x7fa   :  { %v1119_v14 = vsel %vm1108_vm7, %v1112_v13, 0.0 }
 0x7fb   :  { %v1121_v15 = vadd.f32 %v1119_v14, %v743_v12 }
 0x7fd   :  { %1123 = vst [vmem:[#allocation18] sm:$0xff] %v1121_v15  ;;  %v1117_v17 = vpop.permute.xlu1 %1116 }
 0x7fe   :  { %v1120_v18 = vsel %vm1108_vm7, %v1117_v17, 0.0 }
 0x7ff   :  { %v1122_v19 = vadd.f32 %v1120_v18, %v746_v16 }
 0x801   :  { %1124 = vst [vmem:[#allocation18 + $0x8] sm:$0xff] %v1122_v19 }
 0x802   :  { %1552 = shalt.err (!%p1549_p7)
}
 0x803   :  { %s1591_s24 = smov 128   ;;  %s1592_s25 = smov 8  }
 0x804   :  { %1136 = dma.vmem_to_hbm [thread:$0]  %s1131_s14, 256, %s1843_s16, [#allocation5], %s1591_s24, %s1591_s24, %s1592_s25  }
 0x805   :  { %1571 = dma.done.wait [#allocation5], 256  }
 0x806   :  { %1572 = vsyncadd [#allocation5], 4294967040 }
 0x807   :  { %1140 = vsyncpa [#allocation4], 1 }
 0x808   :  { %1141 = vsyncpa [#allocation7], 1 }
 0x809   :  { %1142 = vsyncpa [#allocation10], 1 }
 0x80a   :  { %1143 = vsyncpa [#allocation13], 1 }
 0x80b   :  { %1144 = vsyncpa [#allocation16], 1 }
 0x80c   :  { %1145 = vsyncpa [#allocation5], 1 }

</bundles_post_ra>
